<compile_context>
chip_gen: v7x
topology: tpu7x:2x2x1
jax: 0.10.0
libtpu: 0.0.40
codegen_flags: <defaults>
</compile_context>

<pallas_src>
import jax
import jax.numpy as jnp
from jax.experimental import pallas as pl
from jax.experimental.pallas import tpu as pltpu


def _round_up(x, m):
    return (x + m - 1) // m * m


def _linear_kernel(x_ref, w_ref, b_ref, o_ref):
    # x_ref: (tile_rows, p*dim_in) lane-dense tile of packed edge features.
    # w_ref: (p*dim_in, p*dim_out) block-diagonal replicated weight (f32).
    # b_ref: (1, p*dim_out) tiled bias (f32).
    x = x_ref[...].astype(jnp.float32)  # no-op for f32 input; upcast for bf16
    pred = jnp.dot(x, w_ref[...], preferred_element_type=jnp.float32) + b_ref[...]
    o_ref[...] = pred.astype(o_ref.dtype)


def deep_gcn_edge_linear(edge_attr, lin_w, lin_b, *, tile_edges=4096):
    """pred = edge_attr @ lin_w.T + lin_b, via a lane-dense Pallas kernel.

    edge_attr: [E, dim_in]; lin_w: [dim_out, dim_in] (torch convention);
    lin_b: [dim_out].  Returns pred: [E, dim_out] in edge_attr.dtype.
    """
    E, dim_in = edge_attr.shape
    dim_out = lin_w.shape[0]

    # Pack p edges side-by-side along lanes so the output tile is 128-lane
    # dense (and the input tile is a multiple of 128 lanes).
    p = 1
    if 128 % dim_out == 0 and ((128 // dim_out) * dim_in) % 128 == 0:
        p = 128 // dim_out                # e.g. dim_in=32, dim_out=8 -> p=16
    elif 128 % dim_in == 0:
        p = 128 // dim_in                 # at least make the input lane-dense

    rows_needed = _round_up(E, p) // p    # packed rows required
    tile_rows = min(_round_up(tile_edges, p) // p, _round_up(rows_needed, 8))
    tile_rows = max(8, _round_up(tile_rows, 8))
    rows_pad = _round_up(rows_needed, tile_rows)
    e_pad = rows_pad * p

    x = edge_attr
    if e_pad != E:
        x = jnp.pad(x, ((0, e_pad - E), (0, 0)))
    x_p = x.reshape(rows_pad, p * dim_in)          # free, row-major

    w_t = lin_w.T.astype(jnp.float32)              # [dim_in, dim_out]
    if p > 1:
        eye = jnp.eye(p, dtype=jnp.float32)
        # block-diagonal replication: [p*dim_in, p*dim_out]
        w_k = jnp.einsum("ij,ab->iajb", eye, w_t).reshape(p * dim_in, p * dim_out)
        b_k = jnp.tile(lin_b.astype(jnp.float32), p).reshape(1, p * dim_out)
    else:
        w_k = w_t
        b_k = lin_b.astype(jnp.float32).reshape(1, dim_out)

    grid = (rows_pad // tile_rows,)
    pred_p = pl.pallas_call(
        _linear_kernel,
        out_shape=jax.ShapeDtypeStruct((rows_pad, p * dim_out), edge_attr.dtype),
        grid_spec=pltpu.PrefetchScalarGridSpec(
            num_scalar_prefetch=0,
            grid=grid,
            in_specs=[
                pl.BlockSpec((tile_rows, p * dim_in), lambda i: (i, 0)),
                pl.BlockSpec((p * dim_in, p * dim_out), lambda i: (0, 0)),
                pl.BlockSpec((1, p * dim_out), lambda i: (0, 0)),
            ],
            out_specs=pl.BlockSpec((tile_rows, p * dim_out), lambda i: (i, 0)),
        ),
        compiler_params=pltpu.CompilerParams(
            dimension_semantics=("parallel",),
        ),
    )(x_p, w_k, b_k)

    pred = pred_p.reshape(e_pad, dim_out)[:E]
    return pred


def forward(edge_attr, edge_label, edge_type, params, training=False):
    """Full DeepGCNEdgeHead.forward -> (maskedPred, maskedLabel).

    Note: batch.x = act(norm(edge_attr)) in the torch module is immediately
    overwritten by batch.x = dropout(edge_attr), so the LN+ReLU result is dead
    and is intentionally not computed here.
    """
    NOTWALLTYPE = 1

    # batch.x = F.dropout(edge_attr, p=0.1, training=training)
    # TODO(synk): training-mode dropout omitted (eval -> identity); torch RNG
    #             semantics are not reproducible here.
    _batch_x = edge_attr

    # batch.edge_attr = layer_post_mp(edge_attr)
    pred = deep_gcn_edge_linear(
        edge_attr, params["lin_w"], params["lin_b"]
    )

    # Boolean masking produces data-dependent shapes -> plain (eager) JAX.
    mask = edge_type[:, 1] == NOTWALLTYPE
    masked_pred = pred[mask]
    masked_label = edge_label[mask]
    return masked_pred, masked_label


def _reference(edge_attr, edge_label, edge_type, params):
    pred = edge_attr @ params["lin_w"].T + params["lin_b"]
    mask = edge_type[:, 1] == 1
    return pred[mask], edge_label[mask]


if __name__ == "__main__":
    E = 512        # number of edges (small example)
    dim_in = 32
    dim_out = 8

    key = jax.random.PRNGKey(0)
    k1, k2, k3, k4, k5 = jax.random.split(key, 5)

    edge_attr = jax.random.normal(k1, (E, dim_in), dtype=jnp.float32)
    edge_label = jax.random.randint(k2, (E,), 0, dim_out).astype(jnp.int32)
    edge_type = jax.random.randint(k3, (E, 2), 0, 2).astype(jnp.int32)

    params = {
        "lin_w": jax.random.normal(k4, (dim_out, dim_in), dtype=jnp.float32)
        * (1.0 / jnp.sqrt(dim_in)),
        "lin_b": 0.1 * jax.random.normal(k5, (dim_out,), dtype=jnp.float32),
    }

    masked_pred, masked_label = forward(
        edge_attr, edge_label, edge_type, params, training=False
    )
    jax.block_until_ready((masked_pred, masked_label))

    ref_pred, ref_label = _reference(edge_attr, edge_label, edge_type, params)
    assert masked_pred.shape == ref_pred.shape
    assert jnp.allclose(masked_pred, ref_pred, atol=1e-4, rtol=1e-4)
    assert jnp.array_equal(masked_label, ref_label)

    print("KERNEL_OK")
</pallas_src>

<mosaic_0001>
module attributes {stable_mosaic.version = 11 : i64} {
  func.func @_linear_kernel(%arg0: i32, %arg1: memref<32x512xf32, #tpu.memory_space<vmem>>, %arg2: memref<512x128xf32, #tpu.memory_space<vmem>>, %arg3: memref<1x128xf32, #tpu.memory_space<vmem>>, %arg4: memref<32x128xf32, #tpu.memory_space<vmem>>) attributes {dimension_semantics = [#tpu.dimension_semantics<parallel>], iteration_bounds = array<i64: 1>, scalar_prefetch = 0 : i64, scratch_operands = 0 : i64, tpu.core_type = #tpu.core_type<tc>, window_params = [{transform_indices = @transform_0, window_bounds = array<i64: 32, 512>}, {pipeline_mode = #tpu.pipeline_mode<synchronous>, transform_indices = @transform_1, window_bounds = array<i64: 512, 128>}, {pipeline_mode = #tpu.pipeline_mode<synchronous>, transform_indices = @transform_2, window_bounds = array<i64: 1, 128>}, {transform_indices = @transform_3, window_bounds = array<i64: 32, 128>}]} {
    %c0 = arith.constant 0 : index
    %c0_0 = arith.constant 0 : index
    %0 = vector.load %arg1[%c0, %c0_0] : memref<32x512xf32, #tpu.memory_space<vmem>>, vector<32x512xf32>
    %c0_1 = arith.constant 0 : index
    %c0_2 = arith.constant 0 : index
    %1 = vector.load %arg2[%c0_1, %c0_2] : memref<512x128xf32, #tpu.memory_space<vmem>>, vector<512x128xf32>
    %cst = arith.constant dense<0.000000e+00> : vector<32x128xf32>
    %2 = tpu.matmul %0, %1, %cst {dimension_numbers = #tpu.dot_dimension_numbers<[1], [0], [0], [1], [0, 0, 1, 1], [], []>} : vector<32x512xf32>, vector<512x128xf32>, vector<32x128xf32> -> vector<32x128xf32>
    %c0_3 = arith.constant 0 : index
    %c0_4 = arith.constant 0 : index
    %3 = vector.load %arg3[%c0_3, %c0_4] : memref<1x128xf32, #tpu.memory_space<vmem>>, vector<1x128xf32>
    %4 = vector.broadcast %3 : vector<1x128xf32> to vector<32x128xf32>
    %5 = arith.addf %2, %4 : vector<32x128xf32>
    %c0_5 = arith.constant 0 : index
    %c0_6 = arith.constant 0 : index
    %6 = vector.load %arg4[%c0_5, %c0_6] : memref<32x128xf32, #tpu.memory_space<vmem>>, vector<32x128xf32>
    tpu.vector_store %arg4[%c0_5, %c0_6], %5 {strides = array<i32>} : memref<32x128xf32, #tpu.memory_space<vmem>>, vector<32x128xf32>,
    return
  }
  func.func @transform_0(%arg0: i32) -> (i32, i32) {
    %c0_i32 = arith.constant 0 : i32
    %c0_i32_0 = arith.constant 0 : i32
    return %arg0, %c0_i32 : i32, i32
  }
  func.func @transform_1(%arg0: i32) -> (i32, i32) {
    %c0_i32 = arith.constant 0 : i32
    %c0_i32_0 = arith.constant 0 : i32
    %c0_i32_1 = arith.constant 0 : i32
    return %c0_i32, %c0_i32_0 : i32, i32
  }
  func.func @transform_2(%arg0: i32) -> (i32, i32) {
    %c0_i32 = arith.constant 0 : i32
    %c0_i32_0 = arith.constant 0 : i32
    %c0_i32_1 = arith.constant 0 : i32
    return %c0_i32, %c0_i32_0 : i32, i32
  }
  func.func @transform_3(%arg0: i32) -> (i32, i32) {
    %c0_i32 = arith.constant 0 : i32
    %c0_i32_0 = arith.constant 0 : i32
    return %arg0, %c0_i32 : i32, i32
  }
}

</mosaic_0001>

<bundles_post_ra>
// kernel: tpu_custom_call.1
= control target key start
LH: loop header
LB: loop body
LE: loop exit
PB: predicated region body
PF: predicated region fallthrough
CT: control target
= control target key end

     0   :  { %8 = vsyncpa [#allocation3], 0  ;;  %s626_s0 = inlined_call_operand.hbm [shape: f32[32,512], index: 0, kind: input, shape index: {}]   ;;  %s627_s1 = inlined_call_operand.hbm [shape: f32[512,128], index: 1, kind: input, shape index: {}]   ;;  %s628_s2 = inlined_call_operand.vmem [shape: f32[1,128], index: 2, kind: input, shape index: {}]   ;;  %s629_s3 = inlined_call_operand.hbm [shape: f32[32,128], index: 3, kind: output, shape index: {}]  }
   0x1   :  { %9 = vsyncpa [#allocation6], 0 }
   0x2   :  { %10 = vsyncpa [#allocation4], 0  ;;  %s554_s12 = smov [#allocation2]   ;;  %s482_s16 = scalar_lea.hbm %s626_s0, 2048 }
   0x3   :  { %s16_s13 = sshll.u32 %s554_s12, 4  ;;  %p483_p0 = scmp.ne.s32.totalorder %s626_s0, %s482_s16  ;;  %s17_s13 = int_to_ptr.vmem [resolvable:$true] %s16_s13 }
   0x4   :  { %p486_p1 = scmp.lt.u32.totalorder %s482_s16, %s626_s0 }
   0x6   :  { %p488_p2 = pnand %p486_p1, %p483_p0 }
   0x8   :  { %491 = shalt.err (!%p488_p2)
}
   0x9   :  { %s492_s21 = scalar_lea.vmem %s17_s13, 2048  ;;  %p497_p4 = scmp.lt.s32.totalorder %s17_s13, %s17_s13 }
   0xa   :  { %p493_p3 = scmp.ne.s32.totalorder %s17_s13, %s492_s21  ;;  %p498_p5 = scmp.lt.s32.totalorder %s492_s21, %s492_s21 }
   0xc   :  { %p499_p6 = por %p498_p5, %p497_p4 }
   0xe   :  { %p500_p7 = pnand %p499_p6, %p493_p3 }
  0x10   :  { %503 = shalt.err (!%p500_p7)
}
  0x11   :  { %s555_s22 = smov 512   ;;  %s556_s23 = smov 32  }
  0x12   :  { %22 = dma.hbm_to_vmem [thread:$0]  %s626_s0, 2048, %s17_s13, [#allocation3], %s555_s22, %s555_s22, %s556_s23  }
  0x13   :  { %s557_s26 = smov [#allocation5]   ;;  %s504_s30 = scalar_lea.hbm %s627_s1, 8192 }
  0x14   :  { %s28_s27 = sshll.u32 %s557_s26, 4  ;;  %p505_p8 = scmp.ne.s32.totalorder %s627_s1, %s504_s30  ;;  %s29_s27 = int_to_ptr.vmem [resolvable:$true] %s28_s27 }
  0x15   :  { %p508_p9 = scmp.lt.u32.totalorder %s504_s30, %s627_s1 }
  0x17   :  { %p510_p10 = pnand %p508_p9, %p505_p8 }
  0x19   :  { %513 = shalt.err (!%p510_p10)
}
  0x1a   :  { %s514_s8 = scalar_lea.vmem %s29_s27, 8192  ;;  %p519_p12 = scmp.lt.s32.totalorder %s29_s27, %s29_s27 }
  0x1b   :  { %p515_p11 = scmp.ne.s32.totalorder %s29_s27, %s514_s8  ;;  %p520_p13 = scmp.lt.s32.totalorder %s514_s8, %s514_s8 }
  0x1d   :  { %p521_p0 = por %p520_p13, %p519_p12 }
  0x1f   :  { %p522_p1 = pnand %p521_p0, %p515_p11 }
  0x21   :  { %525 = shalt.err (!%p522_p1)
}
  0x22   :  { %s558_s0 = smov 128   ;;  %s559_s9 = smov 8  }
  0x23   :  { %34 = dma.hbm_to_vmem [thread:$0]  %s627_s1, 8192, %s29_s27, [#allocation6], %s558_s0, %s558_s0, %s559_s9  }
  0x24   :  { %548 = dma.done.wait [#allocation3], 2048  }
  0x25   :  { %549 = vsyncadd [#allocation3], 4294965248 }
  0x26   :  { %550 = dma.done.wait [#allocation6], 8192  }
  0x27   :  { %551 = vsyncadd [#allocation6], 4294959104  ;;  %v75_v0 = vld [vmem:[#allocation5 + $0x80] sm:$0xff]  ;;  %v76_v1 = vld [vmem:[#allocation5 + $0x88] sm:$0xff] }
  0x28   :  { %v59_v2 = vld [vmem:[#allocation5] sm:$0xff]  ;;  %v411_v3 = vpack.c.bf16 %v76_v1, %v75_v0  ;;  %v60_v4 = vld [vmem:[#allocation5 + $0x8] sm:$0xff]  ;;  %v77_v11 = vld [vmem:[#allocation5 + $0x90] sm:$0xff] }
  0x29   :  { %v107_v5 = vld [vmem:[#allocation5 + $0x180] sm:$0xff]  ;;  %v108_v6 = vld [vmem:[#allocation5 + $0x188] sm:$0xff]  ;;  %v413_v7 = vpack.c.bf16 %v60_v4, %v59_v2  ;;  %v78_v13 = vld [vmem:[#allocation5 + $0x98] sm:$0xff] }
  0x2a   :  { %v443_v8 = vpack.c.bf16 %v108_v6, %v107_v5  ;;  %v91_v9 = vld [vmem:[#allocation5 + $0x100] sm:$0xff]  ;;  %v92_v10 = vld [vmem:[#allocation5 + $0x108] sm:$0xff]  ;;  %412 = vmatprep.subr.bf16.mxu0 %v411_v3  ;;  %v61_v14 = vld [vmem:[#allocation5 + $0x10] sm:$0xff]  ;;  %v415_v16 = vpack.c.bf16 %v78_v13, %v77_v11 }
  0x2b   :  { %v445_v12 = vpack.c.bf16 %v92_v10, %v91_v9  ;;  %v62_v15 = vld [vmem:[#allocation5 + $0x18] sm:$0xff]  ;;  %414 = vmatpush3.bf16.msra.mxu0 %v413_v7  ;;  %v109_v18 = vld [vmem:[#allocation5 + $0x190] sm:$0xff]  ;;  %v79_v23 = vld [vmem:[#allocation5 + $0xa0] sm:$0xff] }
  0x2c   :  { %444 = vmatprep.subr.bf16.mxu1 %v443_v8  ;;  %v417_v17 = vpack.c.bf16 %v62_v15, %v61_v14  ;;  %v110_v19 = vld [vmem:[#allocation5 + $0x198] sm:$0xff]  ;;  %v93_v20 = vld [vmem:[#allocation5 + $0x110] sm:$0xff]  ;;  %v80_v24 = vld [vmem:[#allocation5 + $0xa8] sm:$0xff]  ;;  %416 = vmatprep.subr.bf16.mxu0 %v415_v16 }
  0x2d   :  { %446 = vmatpush3.bf16.msra.mxu1 %v445_v12  ;;  %v447_v21 = vpack.c.bf16 %v110_v19, %v109_v18  ;;  %v94_v22 = vld [vmem:[#allocation5 + $0x118] sm:$0xff]  ;;  %v419_v26 = vpack.c.bf16 %v80_v24, %v79_v23  ;;  %v63_v27 = vld [vmem:[#allocation5 + $0x20] sm:$0xff]  ;;  %v64_v28 = vld [vmem:[#allocation5 + $0x28] sm:$0xff] }
  0x2e   :  { %v449_v25 = vpack.c.bf16 %v94_v22, %v93_v20  ;;  %v111_v29 = vld [vmem:[#allocation5 + $0x1a0] sm:$0xff]  ;;  %v112_v30 = vld [vmem:[#allocation5 + $0x1a8] sm:$0xff]  ;;  %v421_v33 = vpack.c.bf16 %v64_v28, %v63_v27  ;;  %v81_v35 = vld [vmem:[#allocation5 + $0xb0] sm:$0xff] }
  0x2f   :  { %448 = vmatprep.subr.bf16.mxu1 %v447_v21  ;;  %v95_v31 = vld [vmem:[#allocation5 + $0x120] sm:$0xff]  ;;  %v96_v32 = vld [vmem:[#allocation5 + $0x128] sm:$0xff]  ;;  %418 = vmatpush3.bf16.msra.mxu0 %v417_v17  ;;  %v451_v34 = vpack.c.bf16 %v112_v30, %v111_v29  ;;  %v82_v36 = vld [vmem:[#allocation5 + $0xb8] sm:$0xff] }
  0x30   :  { %v65_v37 = vld [vmem:[#allocation5 + $0x30] sm:$0xff]  ;;  %420 = vmatprep.subr.bf16.mxu0 %v419_v26  ;;  %v453_v38 = vpack.c.bf16 %v96_v32, %v95_v31  ;;  %v423_v39 = vpack.c.bf16 %v82_v36, %v81_v35  ;;  %v66_v40 = vld [vmem:[#allocation5 + $0x38] sm:$0xff]  ;;  %v83_v46 = vld [vmem:[#allocation5 + $0xc0] sm:$0xff] }
  0x31   :  { %450 = vmatpush3.bf16.msra.mxu1 %v449_v25  ;;  %v113_v41 = vld [vmem:[#allocation5 + $0x1b0] sm:$0xff]  ;;  %v114_v42 = vld [vmem:[#allocation5 + $0x1b8] sm:$0xff]  ;;  %v84_v47 = vld [vmem:[#allocation5 + $0xc8] sm:$0xff]  ;;  %v425_v48 = vpack.c.bf16 %v66_v40, %v65_v37 }
  0x32   :  { %452 = vmatprep.subr.bf16.mxu1 %v451_v34  ;;  %v455_v43 = vpack.c.bf16 %v114_v42, %v113_v41  ;;  %v97_v44 = vld [vmem:[#allocation5 + $0x130] sm:$0xff]  ;;  %v98_v45 = vld [vmem:[#allocation5 + $0x138] sm:$0xff]  ;;  %v115_v49 = vld [vmem:[#allocation5 + $0x1c0] sm:$0xff]  ;;  %v427_v52 = vpack.c.bf16 %v84_v47, %v83_v46 }
  0x33   :  { %422 = vmatpush3.bf16.msra.mxu0 %v421_v33  ;;  %v116_v50 = vld [vmem:[#allocation5 + $0x1c8] sm:$0xff]  ;;  %v457_v51 = vpack.c.bf16 %v98_v45, %v97_v44  ;;  %v67_v53 = vld [vmem:[#allocation5 + $0x40] sm:$0xff]  ;;  %v85_v58 = vld [vmem:[#allocation5 + $0xd0] sm:$0xff] }
  0x34   :  { %424 = vmatprep.subr.bf16.mxu0 %v423_v39  ;;  %v68_v54 = vld [vmem:[#allocation5 + $0x48] sm:$0xff]  ;;  %v99_v55 = vld [vmem:[#allocation5 + $0x140] sm:$0xff]  ;;  %v459_v56 = vpack.c.bf16 %v116_v50, %v115_v49  ;;  %v86_v59 = vld [vmem:[#allocation5 + $0xd8] sm:$0xff] }
  0x35   :  { %454 = vmatpush3.bf16.msra.mxu1 %v453_v38  ;;  %v100_v57 = vld [vmem:[#allocation5 + $0x148] sm:$0xff]  ;;  %v117_v60 = vld [vmem:[#allocation5 + $0x1d0] sm:$0xff]  ;;  %v118_v61 = vld [vmem:[#allocation5 + $0x1d8] sm:$0xff]  ;;  %v429_v62 = vpack.c.bf16 %v68_v54, %v67_v53  ;;  %v431_v0 = vpack.c.bf16 %v86_v59, %v85_v58 }
  0x36   :  { %456 = vmatprep.subr.bf16.mxu1 %v455_v43  ;;  %v461_v63 = vpack.c.bf16 %v100_v57, %v99_v55  ;;  %v69_v1 = vld [vmem:[#allocation5 + $0x50] sm:$0xff]  ;;  %v70_v2 = vld [vmem:[#allocation5 + $0x58] sm:$0xff]  ;;  %v463_v4 = vpack.c.bf16 %v118_v61, %v117_v60  ;;  %v87_v6 = vld [vmem:[#allocation5 + $0xe0] sm:$0xff] }
  0x37   :  { %426 = vmatpush3.bf16.msra.mxu0 %v425_v48  ;;  %v101_v3 = vld [vmem:[#allocation5 + $0x150] sm:$0xff]  ;;  %v102_v5 = vld [vmem:[#allocation5 + $0x158] sm:$0xff]  ;;  %v88_v7 = vld [vmem:[#allocation5 + $0xe8] sm:$0xff]  ;;  %v433_v10 = vpack.c.bf16 %v70_v2, %v69_v1 }
  0x38   :  { %428 = vmatprep.subr.bf16.mxu0 %v427_v52  ;;  %v119_v8 = vld [vmem:[#allocation5 + $0x1e0] sm:$0xff]  ;;  %v120_v9 = vld [vmem:[#allocation5 + $0x1e8] sm:$0xff]  ;;  %v465_v13 = vpack.c.bf16 %v102_v5, %v101_v3  ;;  %v435_v14 = vpack.c.bf16 %v88_v7, %v87_v6  ;;  %v89_v19 = vld [vmem:[#allocation5 + $0xf0] sm:$0xff] }
  0x39   :  { %458 = vmatpush3.bf16.msra.mxu1 %v457_v51  ;;  %v71_v11 = vld [vmem:[#allocation5 + $0x60] sm:$0xff]  ;;  %v72_v12 = vld [vmem:[#allocation5 + $0x68] sm:$0xff]  ;;  %v467_v18 = vpack.c.bf16 %v120_v9, %v119_v8  ;;  %v90_v20 = vld [vmem:[#allocation5 + $0xf8] sm:$0xff] }
  0x3a   :  { %460 = vmatprep.subr.bf16.mxu1 %v459_v56  ;;  %v103_v15 = vld [vmem:[#allocation5 + $0x160] sm:$0xff]  ;;  %v104_v16 = vld [vmem:[#allocation5 + $0x168] sm:$0xff]  ;;  %v46_v21 = vld [vmem:[#allocation2 + $0x18] sm:$0xff]  ;;  %v437_v24 = vpack.c.bf16 %v72_v12, %v71_v11  ;;  %v439_v26 = vpack.c.bf16 %v90_v20, %v89_v19 }
  0x3b   :  { %430 = vmatpush3.bf16.msra.mxu0 %v429_v62  ;;  %v44_v17 = vld [vmem:[#allocation2 + $0x8] sm:$0xff]  ;;  %v121_v22 = vld [vmem:[#allocation5 + $0x1f0] sm:$0xff]  ;;  %v122_v23 = vld [vmem:[#allocation5 + $0x1f8] sm:$0xff]  ;;  %279 = vmatprep.mubr.f32.mxu1 %v46_v21  ;;  %v469_v25 = vpack.c.bf16 %v104_v16, %v103_v15 }
  0x3c   :  { %432 = vmatprep.subr.bf16.mxu0 %v431_v0  ;;  %194 = vmatprep.mubr.f32.mxu0 %v44_v17  ;;  %v73_v27 = vld [vmem:[#allocation5 + $0x70] sm:$0xff]  ;;  %v74_v28 = vld [vmem:[#allocation5 + $0x78] sm:$0xff]  ;;  %v471_v29 = vpack.c.bf16 %v122_v23, %v121_v22  ;;  %v43_v34 = vld [vmem:[#allocation2] sm:$0xff] }
  0x3d   :  { %462 = vmatpush3.bf16.msra.mxu1 %v461_v63  ;;  %v105_v30 = vld [vmem:[#allocation5 + $0x170] sm:$0xff]  ;;  %v106_v31 = vld [vmem:[#allocation5 + $0x178] sm:$0xff]  ;;  %v441_v32 = vpack.c.bf16 %v74_v28, %v73_v27  ;;  %v48_v36 = vld [vmem:[#allocation2 + $0x28] sm:$0xff] }
  0x3e   :  { %464 = vmatprep.subr.bf16.mxu1 %v463_v4  ;;  %v473_v33 = vpack.c.bf16 %v106_v31, %v105_v30  ;;  %v45_v35 = vld [vmem:[#allocation2 + $0x10] sm:$0xff]  ;;  %v50_v37 = vld [vmem:[#allocation2 + $0x38] sm:$0xff]  ;;  %v47_v38 = vld [vmem:[#allocation2 + $0x20] sm:$0xff] }
  0x3f   :  { %434 = vmatpush3.bf16.msra.mxu0 %v433_v10  ;;  %v49_v39 = vld [vmem:[#allocation2 + $0x30] sm:$0xff]  ;;  %v52_v40 = vld [vmem:[#allocation2 + $0x48] sm:$0xff]  ;;  %v54_v41 = vld [vmem:[#allocation2 + $0x58] sm:$0xff] }
  0x40   :  { %436 = vmatprep.subr.bf16.mxu0 %v435_v14  ;;  %v51_v42 = vld [vmem:[#allocation2 + $0x40] sm:$0xff]  ;;  %v53_v43 = vld [vmem:[#allocation2 + $0x50] sm:$0xff]  ;;  %v56_v44 = vld [vmem:[#allocation2 + $0x68] sm:$0xff] }
  0x41   :  { %466 = vmatpush3.bf16.msra.mxu1 %v465_v13  ;;  %v58_v45 = vld [vmem:[#allocation2 + $0x78] sm:$0xff]  ;;  %v55_v46 = vld [vmem:[#allocation2 + $0x60] sm:$0xff]  ;;  %v57_v47 = vld [vmem:[#allocation2 + $0x70] sm:$0xff] }
  0x42   :  { %468 = vmatprep.subr.bf16.mxu1 %v467_v18  ;;  %v322_v49 = vld [vmem:[%s628_s2] ss:$0 sm:$0xff]  ;;  %s560_s2 = smov [#allocation7]  }
  0x43   :  { %438 = vmatpush3.bf16.msra.mxu0 %v437_v24  ;;  %s309_s13 = sshll.u32 %s560_s2, 4  ;;  %s310_s13 = int_to_ptr.vmem [resolvable:$true] %s309_s13 }
  0x44   :  { %440 = vmatprep.subr.bf16.mxu0 %v439_v26  ;;  %s526_s14 = scalar_lea.vmem %s310_s13, 512  ;;  %p531_p3 = scmp.lt.s32.totalorder %s310_s13, %s310_s13 }
  0x45   :  { %470 = vmatpush3.bf16.msra.mxu1 %v469_v25  ;;  %p527_p2 = scmp.ne.s32.totalorder %s310_s13, %s526_s14  ;;  %p532_p4 = scmp.lt.s32.totalorder %s526_s14, %s526_s14 }
  0x46   :  { %472 = vmatprep.subr.bf16.mxu1 %v471_v29 }
  0x47   :  { %442 = vmatpush3.bf16.msra.mxu0 %v441_v32  ;;  %p533_p5 = por %p532_p4, %p531_p3 }
  0x49   :  { %474 = vmatpush3.bf16.msra.mxu1 %v473_v33  ;;  %p534_p6 = pnand %p533_p5, %p527_p2 }
  0x4a   :  { %195 = vmatmul.mubr.f32.vlgmr.msra.gmra.mrb[0].mxu0 %v43_v34 }
  0x4b   :  { %199 = vmatprep.mubr.f32.mxu0 %v48_v36 }
  0x4c   :  { %280 = vmatmul.mubr.f32.vlgmr.msra.gmra.mrb[0].mxu1 %v45_v35 }
  0x4d   :  { %284 = vmatprep.mubr.f32.mxu1 %v50_v37 }
  0x4e   :  { %200 = vmatmul.mubr.f32.gmra.mrb[2].mxu0 %v47_v38 }
  0x4f   :  { %204 = vmatprep.mubr.f32.mxu0 %v52_v40 }
  0x50   :  { %285 = vmatmul.mubr.f32.gmra.mrb[2].mxu1 %v49_v39 }
  0x51   :  { %289 = vmatprep.mubr.f32.mxu1 %v54_v41 }
  0x52   :  { %205 = vmatmul.mubr.f32.gmra.mrb[4].mxu0 %v51_v42 }
  0x53   :  { %209 = vmatprep.mubr.f32.mxu0 %v56_v44 }
  0x54   :  { %290 = vmatmul.mubr.f32.gmra.mrb[4].mxu1 %v53_v43 }
  0x55   :  { %294 = vmatprep.mubr.f32.mxu1 %v58_v45 }
  0x56   :  { %210 = vmatmul.mubr.f32.gmra.mrb[6].mxu0 %v55_v46 }
  0x58   :  { %295 = vmatmul.mubr.f32.gmra.mrb[6].mxu1 %v57_v47 }
 0x11d   :  { %v355_v48 = vpop.f32.mrb[0].mxu0 }
 0x11e   :  { %v356_v50 = vpop.f32.mrb[1].mxu0 }
 0x11f   :  { %v399_v51 = vpop.f32.mrb[0].mxu1  ;;  %v357_v52 = vadd.f32 %v356_v50, %v355_v48 }
 0x120   :  { %v400_v53 = vpop.f32.mrb[1].mxu1 }
 0x121   :  { %v401_v54 = vadd.f32 %v400_v53, %v399_v51  ;;  %v197_v55 = vadd.f32 %v357_v52, %v322_v49  ;;  %v358_v56 = vpop.f32.mrb[2].mxu0 }
 0x122   :  { %v359_v57 = vpop.f32.mrb[3].mxu0 }
 0x123   :  { %v402_v58 = vpop.f32.mrb[2].mxu1  ;;  %v282_v59 = vadd.f32 %v401_v54, %v197_v55  ;;  %v360_v60 = vadd.f32 %v359_v57, %v358_v56 }
 0x124   :  { %v403_v61 = vpop.f32.mrb[3].mxu1 }
 0x125   :  { %v404_v62 = vadd.f32 %v403_v61, %v402_v58  ;;  %300 = vst [vmem:[#allocation7] sm:$0xff] %v282_v59  ;;  %v202_v63 = vadd.f32 %v360_v60, %v322_v49  ;;  %v361_v0 = vpop.f32.mrb[4].mxu0 }
 0x126   :  { %v362_v1 = vpop.f32.mrb[5].mxu0 }
 0x127   :  { %v405_v2 = vpop.f32.mrb[4].mxu1  ;;  %v287_v3 = vadd.f32 %v404_v62, %v202_v63  ;;  %v363_v4 = vadd.f32 %v362_v1, %v361_v0 }
 0x128   :  { %v406_v5 = vpop.f32.mrb[5].mxu1 }
 0x129   :  { %v407_v6 = vadd.f32 %v406_v5, %v405_v2  ;;  %301 = vst [vmem:[#allocation7 + $0x8] sm:$0xff] %v287_v3  ;;  %v207_v7 = vadd.f32 %v363_v4, %v322_v49  ;;  %v364_v8 = vpop.f32.mrb[6].mxu0 }
 0x12a   :  { %v365_v9 = vpop.f32.mrb[7].mxu0 }
 0x12b   :  { %v408_v10 = vpop.f32.mrb[6].mxu1  ;;  %v292_v11 = vadd.f32 %v407_v6, %v207_v7  ;;  %v366_v12 = vadd.f32 %v365_v9, %v364_v8 }
 0x12c   :  { %v409_v13 = vpop.f32.mrb[7].mxu1 }
 0x12d   :  { %v410_v14 = vadd.f32 %v409_v13, %v408_v10  ;;  %302 = vst [vmem:[#allocation7 + $0x10] sm:$0xff] %v292_v11  ;;  %v212_v15 = vadd.f32 %v366_v12, %v322_v49 }
 0x12f   :  { %v297_v16 = vadd.f32 %v410_v14, %v212_v15 }
 0x131   :  { %303 = vst [vmem:[#allocation7 + $0x18] sm:$0xff] %v297_v16 }
 0x132   :  { %537 = shalt.err (!%p534_p6)
}
 0x133   :  { %s538_s17 = scalar_lea.hbm %s629_s3, 512 }
 0x134   :  { %p539_p7 = scmp.ne.s32.totalorder %s629_s3, %s538_s17  ;;  %p542_p8 = scmp.lt.u32.totalorder %s538_s17, %s629_s3 }
 0x136   :  { %p544_p9 = pnand %p542_p8, %p539_p7 }
 0x138   :  { %547 = shalt.err (!%p544_p9)
}
 0x139   :  { %315 = dma.vmem_to_hbm [thread:$0]  %s310_s13, 512, %s629_s3, [#allocation4], %s558_s0, %s558_s0, %s559_s9  }
 0x13a   :  { %552 = dma.done.wait [#allocation4], 512  }
 0x13b   :  { %553 = vsyncadd [#allocation4], 4294966784 }
 0x13c   :  { %319 = vsyncpa [#allocation3], 1 }
 0x13d   :  { %320 = vsyncpa [#allocation6], 1 }
 0x13e   :  { %321 = vsyncpa [#allocation4], 1 }

</bundles_post_ra>
